<compile_context>
chip_gen: v5e
topology: v5e:2x2
jax: 0.10.0
libtpu: 0.0.40
codegen_flags: <defaults>
</compile_context>

<pallas_src>
import jax
import jax.numpy as jnp
from jax.experimental import pallas as pl
from jax.experimental.pallas import tpu as pltpu


def _round_up(x, m):
    return (x + m - 1) // m * m


def _head_kernel(x0_ref, x1_ref, x2_ref, x3_ref,
                 w1_ref, b1_ref, w2_ref, b2_ref, o_ref):
    """Fused CLS-concat + extractor (Linear+Tanh) + classifier (Linear+Sigmoid).

    x{0..3}_ref : [Bp, D]   bf16 CLS features of BERT layers L-4 .. L-1 (Bp = padded B)
    w1_ref      : [4, D, D] bf16 extractor weight, [in, out]-transposed and split into
                            the 4 K-chunks matching the layer-major concat order
    b1_ref      : [1, D]    f32 extractor bias
    w2_ref      : [D, Cp]   bf16 classifier weight, [in, out]-transposed, lane-padded
    b2_ref      : [1, Cp]   f32 classifier bias (lane-padded)
    o_ref       : [Bp, Cp]  f32 sigmoid outputs (lane-dense store)
    """
    # TODO(synk): nn.Dropout is identity at inference; training-mode dropout
    #             (pltpu.prng_random_bits masking) is intentionally not applied.
    # extractor: cat([CLS_{L-4..L-1}]) @ W1 expressed as a K-split sum of 4 MXU
    # matmuls with f32 accumulation -> the concat is free on the MXU.
    h = jnp.dot(x0_ref[...], w1_ref[0], preferred_element_type=jnp.float32)
    h = h + jnp.dot(x1_ref[...], w1_ref[1], preferred_element_type=jnp.float32)
    h = h + jnp.dot(x2_ref[...], w1_ref[2], preferred_element_type=jnp.float32)
    h = h + jnp.dot(x3_ref[...], w1_ref[3], preferred_element_type=jnp.float32)
    h = jnp.tanh(h + b1_ref[...])                      # f32 epilogue (EUP), v5e-safe
    # classifier: bf16 MXU matmul into a 128-lane padded output tile.
    z = jnp.dot(h.astype(w2_ref.dtype), w2_ref[...],
                preferred_element_type=jnp.float32) + b2_ref[...]
    o_ref[...] = jax.nn.sigmoid(z).astype(o_ref.dtype)


def bert_based_head(cls_layers, w1_t, b1, w2_t, b2):
    """Run the fused head kernel on the 4 per-layer [B, D] CLS slices."""
    B, D = cls_layers[0].shape
    Din, Dout = w1_t.shape
    C = w2_t.shape[1]
    assert Din == 4 * D and Dout == D and w2_t.shape[0] == D

    Bp = _round_up(B, 8)      # full sublanes
    Cp = _round_up(C, 128)    # lane-dense (unmasked) output stores

    # bf16 MXU operands; biases stay f32.
    xs = [jnp.pad(x, ((0, Bp - B), (0, 0))).astype(jnp.bfloat16) for x in cls_layers]
    w1_k = w1_t.reshape(4, D, D).astype(jnp.bfloat16)          # per-layer K chunks
    b1_2d = b1.reshape(1, D).astype(jnp.float32)
    w2_p = jnp.pad(w2_t, ((0, 0), (0, Cp - C))).astype(jnp.bfloat16)
    b2_p = jnp.pad(b2, (0, Cp - C)).reshape(1, Cp).astype(jnp.float32)

    # No grid: a single step has nothing to pipeline, so all operands live whole in
    # VMEM and there is no per-step pipeline overhead.
    # (For production BERT dims, add a grid over the batch marked "parallel", keep
    #  W1/W2 resident via constant index_maps, and size the batch tile to the chip's
    #  VMEM: ~64 MiB on v7x, 128 MiB on v6e/v5e, with vmem_limit_bytes raised.)
    out = pl.pallas_call(
        _head_kernel,
        out_shape=jax.ShapeDtypeStruct((Bp, Cp), jnp.float32),
        in_specs=[pl.BlockSpec(memory_space=pltpu.MemorySpace.VMEM)] * 8,
        out_specs=pl.BlockSpec(memory_space=pltpu.MemorySpace.VMEM),
    )(*xs, w1_k, b1_2d, w2_p, b2_p)
    return out[:B, :C]


def bert_based_forward(hidden_states, w1_t, b1, w2_t, b2):
    """Post-BERT part of BERT_based.forward.

    hidden_states: [L, B, S, D] stack of all BERT hidden states.
    Returns sigmoid logits with size-1 dims squeezed (matches torch .squeeze()).
    """
    L = hidden_states.shape[0]
    # CLS token (seq position 0) of the last 4 layers in layer-major order; this is
    # exactly cat(hidden_states[-4:])[:, :, 0:1, :].permute(1, 2, 0, 3).reshape(B, -1)
    # split into its 4 per-layer chunks (the concat itself is fused into the kernel).
    cls_layers = [hidden_states[L - 4 + l, :, 0, :] for l in range(4)]
    logits = bert_based_head(cls_layers, w1_t, b1, w2_t, b2)   # [B, C]
    return jnp.squeeze(logits)                                 # matches torch .squeeze()


def _init_linear(key, fan_in, fan_out):
    """Deterministic init mimicking torch.nn.Linear default (uniform +-1/sqrt(fan_in))."""
    kw, kb = jax.random.split(key)
    bound = 1.0 / jnp.sqrt(jnp.float32(fan_in))
    # Stored directly as [in, out] (i.e. transposed vs. torch's [out, in]).
    w_t = jax.random.uniform(kw, (fan_in, fan_out), jnp.float32, -bound, bound)
    b = jax.random.uniform(kb, (fan_out,), jnp.float32, -bound, bound)
    return w_t, b


if __name__ == "__main__":
    # Small shapes consistent with the module's forward:
    #   bert_dim = 32, class_num = 4, batch = 2, seq = 8, num BERT layers = 6 (>=4).
    B, S, D, C, L = 2, 8, 32, 4, 6

    key = jax.random.PRNGKey(0)
    k_hs, k_ext, k_cls = jax.random.split(key, 3)

    # Synthetic BERT hidden states (stand-in for outputs.hidden_states).
    hidden_states = jax.random.normal(k_hs, (L, B, S, D), jnp.float32)

    # extractor:  Linear(bert_dim * 4, bert_dim)
    w1_t, b1 = _init_linear(k_ext, 4 * D, D)
    # classifier: Linear(bert_dim, class_num)
    w2_t, b2 = _init_linear(k_cls, D, C)

    logits = bert_based_forward(hidden_states, w1_t, b1, w2_t, b2)
    logits = jax.block_until_ready(logits)

    # Pure-JAX references (using the original transpose/concat formulation).
    cls = jnp.transpose(hidden_states[-4:][:, :, 0:1, :], (1, 2, 0, 3)).reshape(B, -1)

    # (a) same-precision reference: bf16 MXU inputs, f32 accumulation/epilogue.
    h_ref = jnp.tanh(
        jnp.dot(cls.astype(jnp.bfloat16), w1_t.astype(jnp.bfloat16),
                preferred_element_type=jnp.float32) + b1)
    ref_bf16 = jax.nn.sigmoid(
        jnp.dot(h_ref.astype(jnp.bfloat16), w2_t.astype(jnp.bfloat16),
                preferred_element_type=jnp.float32) + b2)
    ref_bf16 = jnp.squeeze(ref_bf16)

    # (b) full-f32 reference (module semantics).
    ref_f32 = jnp.squeeze(jax.nn.sigmoid(jnp.tanh(cls @ w1_t + b1) @ w2_t + b2))

    assert logits.shape == ref_f32.shape
    assert jnp.allclose(logits, ref_bf16, atol=5e-3, rtol=5e-3)
    assert jnp.allclose(logits, ref_f32, atol=3e-2, rtol=3e-2)

    print("KERNEL_OK")
</pallas_src>

<mosaic_0001>
module attributes {stable_mosaic.version = 11 : i64} {
  func.func @_head_kernel(%arg0: memref<8x32xbf16, #tpu.memory_space<vmem>>, %arg1: memref<8x32xbf16, #tpu.memory_space<vmem>>, %arg2: memref<8x32xbf16, #tpu.memory_space<vmem>>, %arg3: memref<8x32xbf16, #tpu.memory_space<vmem>>, %arg4: memref<4x32x32xbf16, #tpu.memory_space<vmem>>, %arg5: memref<1x32xf32, #tpu.memory_space<vmem>>, %arg6: memref<32x128xbf16, #tpu.memory_space<vmem>>, %arg7: memref<1x128xf32, #tpu.memory_space<vmem>>, %arg8: memref<8x128xf32, #tpu.memory_space<vmem>>) attributes {dimension_semantics = [], scalar_prefetch = 0 : i64, scratch_operands = 0 : i64, tpu.core_type = #tpu.core_type<tc>} {
    %c0 = arith.constant 0 : index
    %c0_0 = arith.constant 0 : index
    %0 = vector.load %arg0[%c0, %c0_0] : memref<8x32xbf16, #tpu.memory_space<vmem>>, vector<8x32xbf16>
    %c0_1 = arith.constant 0 : index
    %c0_2 = arith.constant 0 : index
    %c0_3 = arith.constant 0 : index
    %1 = vector.load %arg4[%c0_1, %c0_2, %c0_3] : memref<4x32x32xbf16, #tpu.memory_space<vmem>>, vector<1x32x32xbf16>
    %2 = vector.shape_cast %1 : vector<1x32x32xbf16> to vector<32x32xbf16>
    %cst = arith.constant dense<0.000000e+00> : vector<8x32xf32>
    %3 = tpu.matmul %0, %2, %cst {dimension_numbers = #tpu.dot_dimension_numbers<[1], [0], [0], [1], [0, 0, 1, 1], [], []>} : vector<8x32xbf16>, vector<32x32xbf16>, vector<8x32xf32> -> vector<8x32xf32>
    %c0_4 = arith.constant 0 : index
    %c0_5 = arith.constant 0 : index
    %4 = vector.load %arg1[%c0_4, %c0_5] : memref<8x32xbf16, #tpu.memory_space<vmem>>, vector<8x32xbf16>
    %c1 = arith.constant 1 : index
    %c0_6 = arith.constant 0 : index
    %c0_7 = arith.constant 0 : index
    %5 = vector.load %arg4[%c1, %c0_6, %c0_7] : memref<4x32x32xbf16, #tpu.memory_space<vmem>>, vector<1x32x32xbf16>
    %6 = vector.shape_cast %5 : vector<1x32x32xbf16> to vector<32x32xbf16>
    %cst_8 = arith.constant dense<0.000000e+00> : vector<8x32xf32>
    %7 = tpu.matmul %4, %6, %cst_8 {dimension_numbers = #tpu.dot_dimension_numbers<[1], [0], [0], [1], [0, 0, 1, 1], [], []>} : vector<8x32xbf16>, vector<32x32xbf16>, vector<8x32xf32> -> vector<8x32xf32>
    %8 = arith.addf %3, %7 : vector<8x32xf32>
    %c0_9 = arith.constant 0 : index
    %c0_10 = arith.constant 0 : index
    %9 = vector.load %arg2[%c0_9, %c0_10] : memref<8x32xbf16, #tpu.memory_space<vmem>>, vector<8x32xbf16>
    %c2 = arith.constant 2 : index
    %c0_11 = arith.constant 0 : index
    %c0_12 = arith.constant 0 : index
    %10 = vector.load %arg4[%c2, %c0_11, %c0_12] : memref<4x32x32xbf16, #tpu.memory_space<vmem>>, vector<1x32x32xbf16>
    %11 = vector.shape_cast %10 : vector<1x32x32xbf16> to vector<32x32xbf16>
    %cst_13 = arith.constant dense<0.000000e+00> : vector<8x32xf32>
    %12 = tpu.matmul %9, %11, %cst_13 {dimension_numbers = #tpu.dot_dimension_numbers<[1], [0], [0], [1], [0, 0, 1, 1], [], []>} : vector<8x32xbf16>, vector<32x32xbf16>, vector<8x32xf32> -> vector<8x32xf32>
    %13 = arith.addf %8, %12 : vector<8x32xf32>
    %c0_14 = arith.constant 0 : index
    %c0_15 = arith.constant 0 : index
    %14 = vector.load %arg3[%c0_14, %c0_15] : memref<8x32xbf16, #tpu.memory_space<vmem>>, vector<8x32xbf16>
    %c3 = arith.constant 3 : index
    %c0_16 = arith.constant 0 : index
    %c0_17 = arith.constant 0 : index
    %15 = vector.load %arg4[%c3, %c0_16, %c0_17] : memref<4x32x32xbf16, #tpu.memory_space<vmem>>, vector<1x32x32xbf16>
    %16 = vector.shape_cast %15 : vector<1x32x32xbf16> to vector<32x32xbf16>
    %cst_18 = arith.constant dense<0.000000e+00> : vector<8x32xf32>
    %17 = tpu.matmul %14, %16, %cst_18 {dimension_numbers = #tpu.dot_dimension_numbers<[1], [0], [0], [1], [0, 0, 1, 1], [], []>} : vector<8x32xbf16>, vector<32x32xbf16>, vector<8x32xf32> -> vector<8x32xf32>
    %18 = arith.addf %13, %17 : vector<8x32xf32>
    %c0_19 = arith.constant 0 : index
    %c0_20 = arith.constant 0 : index
    %19 = vector.load %arg5[%c0_19, %c0_20] : memref<1x32xf32, #tpu.memory_space<vmem>>, vector<1x32xf32>
    %20 = vector.broadcast %19 : vector<1x32xf32> to vector<8x32xf32>
    %21 = arith.addf %18, %20 : vector<8x32xf32>
    %22 = math.tanh %21 : vector<8x32xf32>
    %23 = arith.truncf %22 : vector<8x32xf32> to vector<8x32xbf16>
    %c0_21 = arith.constant 0 : index
    %c0_22 = arith.constant 0 : index
    %24 = vector.load %arg6[%c0_21, %c0_22] : memref<32x128xbf16, #tpu.memory_space<vmem>>, vector<32x128xbf16>
    %cst_23 = arith.constant dense<0.000000e+00> : vector<8x128xf32>
    %25 = tpu.matmul %23, %24, %cst_23 {dimension_numbers = #tpu.dot_dimension_numbers<[1], [0], [0], [1], [0, 0, 1, 1], [], []>} : vector<8x32xbf16>, vector<32x128xbf16>, vector<8x128xf32> -> vector<8x128xf32>
    %c0_24 = arith.constant 0 : index
    %c0_25 = arith.constant 0 : index
    %26 = vector.load %arg7[%c0_24, %c0_25] : memref<1x128xf32, #tpu.memory_space<vmem>>, vector<1x128xf32>
    %27 = vector.broadcast %26 : vector<1x128xf32> to vector<8x128xf32>
    %28 = arith.addf %25, %27 : vector<8x128xf32>
    %29 = arith.negf %28 : vector<8x128xf32>
    %30 = math.exp %29 : vector<8x128xf32>
    %cst_26 = arith.constant 1.000000e+00 : f32
    %31 = vector.broadcast %cst_26 : f32 to vector<8x128xf32>
    %32 = arith.addf %31, %30 : vector<8x128xf32>
    %33 = arith.divf %31, %32 : vector<8x128xf32>
    %c0_27 = arith.constant 0 : index
    %c0_28 = arith.constant 0 : index
    %34 = vector.load %arg8[%c0_27, %c0_28] : memref<8x128xf32, #tpu.memory_space<vmem>>, vector<8x128xf32>
    tpu.vector_store %arg8[%c0_27, %c0_28], %33 {strides = array<i32>} : memref<8x128xf32, #tpu.memory_space<vmem>>, vector<8x128xf32>,
    return
  }
}

</mosaic_0001>

<bundles_post_ra>
// kernel: tpu_custom_call.1
= control target key start
LH: loop header
LB: loop body
LE: loop exit
PB: predicated region body
PF: predicated region fallthrough
CT: control target
= control target key end

     0   :  { %13 = vsyncpa [#allocation3], 0  ;;  %s675_s0 = inlined_call_operand.hbm [shape: bf16[8,32], index: 0, kind: input, shape index: {}]   ;;  %s676_s1 = inlined_call_operand.hbm [shape: bf16[8,32], index: 1, kind: input, shape index: {}]   ;;  %s677_s2 = inlined_call_operand.hbm [shape: bf16[8,32], index: 2, kind: input, shape index: {}]   ;;  %s678_s3 = inlined_call_operand.hbm [shape: bf16[8,32], index: 3, kind: input, shape index: {}]   ;;  %s679_s4 = inlined_call_operand.hbm [shape: bf16[4,32,32], index: 4, kind: input, shape index: {}]   ;;  %s680_s5 = inlined_call_operand.vmem [shape: f32[1,32], index: 5, kind: input, shape index: {}]   ;;  %s681_s6 = inlined_call_operand.hbm [shape: bf16[32,128], index: 6, kind: input, shape index: {}]   ;;  %s682_s7 = inlined_call_operand.vmem [shape: f32[1,128], index: 7, kind: input, shape index: {}]   ;;  %s683_s8 = inlined_call_operand.hbm [shape: f32[8,128], index: 8, kind: output, shape index: {}]  }
   0x1   :  { %14 = vsyncpa [#allocation6], 0 }
   0x2   :  { %15 = vsyncpa [#allocation9], 0 }
   0x3   :  { %16 = vsyncpa [#allocation12], 0  ;;  %s34_s29 = sshll.u32 %s676_s1, 4  ;;  %s35_s29 = int_to_ptr.hbm [resolvable:$true] %s34_s29 }
   0x4   :  { %17 = vsyncpa [#allocation4], 0  ;;  %s589_s30 = smov [#allocation5]   ;;  %s56_s12 = sshll.u32 %s678_s3, 4  ;;  %s57_s12 = int_to_ptr.hbm [resolvable:$true] %s56_s12 }
   0x5   :  { %s36_s9 = sshll.u32 %s589_s30, 4  ;;  %s590_s13 = smov [#allocation8]   ;;  %s37_s9 = int_to_ptr.vmem [resolvable:$true] %s36_s9 }
   0x6   :  { %39 = dma.hbm_to_vmem [thread:$0]  %s35_s29, 64, %s37_s9, [#allocation6]  }
   0x7   :  { %s58_s14 = sshll.u32 %s590_s13, 4  ;;  %s23_s17 = sshll.u32 %s675_s0, 4  ;;  %s59_s14 = int_to_ptr.vmem [resolvable:$true] %s58_s14  ;;  %s24_s17 = int_to_ptr.hbm [resolvable:$true] %s23_s17 }
   0x8   :  { %61 = dma.hbm_to_vmem [thread:$0]  %s57_s12, 64, %s59_s14, [#allocation9]  }
   0x9   :  { %s45_s19 = sshll.u32 %s677_s2, 4  ;;  %s591_s20 = smov [#allocation2]   ;;  %s46_s19 = int_to_ptr.hbm [resolvable:$true] %s45_s19 }
   0xa   :  { %s25_s21 = sshll.u32 %s591_s20, 4  ;;  %s592_s3 = smov [#allocation7]   ;;  %s26_s21 = int_to_ptr.vmem [resolvable:$true] %s25_s21 }
   0xb   :  { %28 = dma.hbm_to_vmem [thread:$0]  %s24_s17, 64, %s26_s21, [#allocation3]  }
   0xc   :  { %s47_s22 = sshll.u32 %s592_s3, 4  ;;  %s66_s25 = sshll.u32 %s679_s4, 4  ;;  %s48_s22 = int_to_ptr.vmem [resolvable:$true] %s47_s22  ;;  %s67_s25 = int_to_ptr.hbm [resolvable:$true] %s66_s25 }
   0xd   :  { %50 = dma.hbm_to_vmem [thread:$0]  %s46_s19, 64, %s48_s22, [#allocation6]  }
   0xe   :  { %s593_s0 = smov [#allocation10]   ;;  %s81_s2 = sshll.u32 %s681_s6, 4  ;;  %s82_s2 = int_to_ptr.hbm [resolvable:$true] %s81_s2 }
   0xf   :  { %s68_s26 = sshll.u32 %s593_s0, 4  ;;  %s594_s29 = smov 64   ;;  %s69_s26 = int_to_ptr.vmem [resolvable:$true] %s68_s26 }
  0x10   :  { %s595_s30 = smov 4   ;;  %s596_s9 = smov [#allocation11]  }
  0x11   :  { %74 = dma.hbm_to_vmem [thread:$0]  %s67_s25, 1024, %s69_s26, [#allocation9], %s594_s29, %s594_s29, %s595_s30  }
  0x12   :  { %s83_s10 = sshll.u32 %s596_s9, 4  ;;  %s84_s10 = int_to_ptr.vmem [resolvable:$true] %s83_s10 }
  0x13   :  { %89 = dma.hbm_to_vmem [thread:$0]  %s82_s2, 256, %s84_s10, [#allocation12], %s594_s29, %s594_s29, %s595_s30  }
  0x14   :  { %579 = dma.done.wait [#allocation3], 64  }
  0x15   :  { %580 = vsyncadd [#allocation3], 4294967232 }
  0x16   :  { %581 = dma.done.wait [#allocation6], 128  }
  0x17   :  { %582 = vsyncadd [#allocation6], 4294967168 }
  0x18   :  { %583 = dma.done.wait [#allocation9], 1088  }
  0x19   :  { %584 = vsyncadd [#allocation9], 4294966208 }
  0x1a   :  { %585 = dma.done.wait [#allocation12], 256  }
  0x1b   :  { %586 = vsyncadd [#allocation12], 4294967040  ;;  %v387_v0 = vld [vmem:[#allocation10 + $0x18] sm:$0xff]  ;;  %v385_v1 = vld [vmem:[#allocation10 + $0x8] sm:$0xff]  ;;  %vm140_vm0 = vcmask 261120  }
  0x1c   :  { %v389_v2 = vld [vmem:[#allocation10 + $0x28] sm:$0xff]  ;;  %v391_v3 = vld [vmem:[#allocation10 + $0x38] sm:$0xff]  ;;  %150 = vmatpush.bf16.msra.mxu0 %v387_v0  ;;  %178 = vmatpush.bf16.msra.mxu1 %v385_v1  ;;  %v386_v4 = vld [vmem:[#allocation10 + $0x10] sm:$0xff] }
  0x1d   :  { %v384_v5 = vld [vmem:[#allocation10] sm:$0xff]  ;;  %212 = vmatpush.bf16.msra.mxu2 %v389_v2  ;;  %247 = vmatpush.bf16.msra.mxu3 %v391_v3  ;;  %v390_v7 = vld [vmem:[#allocation10 + $0x30] sm:$0xff]  ;;  %v185_v10 = vld [vmem:[#allocation7] sm:$0xf] }
  0x1e   :  { %v388_v6 = vld [vmem:[#allocation10 + $0x20] sm:$0xff]  ;;  %v122_v8 = vld [vmem:[#allocation5] sm:$0xf]  ;;  %v117_v9 = vld [vmem:[#allocation2] sm:$0xf] }
  0x1f   :  { %v220_v11 = vld [vmem:[#allocation8] sm:$0xf]  ;;  %v393_v12 = vld [vmem:[#allocation11 + $0x8] sm:$0xff]  ;;  %v392_v13 = vld [vmem:[#allocation11] sm:$0xff] }
  0x20   :  { %151 = vmatpush.bf16.msra.mxu0 %v386_v4  ;;  %179 = vmatpush.bf16.msra.mxu1 %v384_v5  ;;  %v403_v20 = vld [vmem:[%s680_s5] ss:$0 sm:$0xff]  ;;  %s597_s5 = smov [#allocation13]  }
  0x21   :  { %213 = vmatpush.bf16.msra.mxu2 %v388_v6  ;;  %248 = vmatpush.bf16.msra.mxu3 %v390_v7  ;;  %v404_v29 = vld [vmem:[%s682_s7] ss:$0 sm:$0xff]  ;;  %s323_s13 = sshll.u32 %s597_s5, 4  ;;  %s325_s7 = sshll.u32 %s683_s8, 4  ;;  %s324_s13 = int_to_ptr.vmem [resolvable:$true] %s323_s13  ;;  %s326_s7 = int_to_ptr.hbm [resolvable:$true] %s325_s7 }
  0x23   :  { %346 = vmatmul.msk.bf16.vlgmr.msra.gmra.mxu0 %vm140_vm0, %v122_v8  ;;  %355 = vmatmul.msk.bf16.vlgmr.msra.gmra.mxu1 %vm140_vm0, %v117_v9 }
  0x24   :  { %364 = vmatmul.msk.bf16.vlgmr.msra.gmra.mxu2 %vm140_vm0, %v185_v10  ;;  %373 = vmatmul.msk.bf16.vlgmr.msra.gmra.mxu3 %vm140_vm0, %v220_v11 }
  0x25   :  { %291 = vmatpush.bf16.msrb.mxu0 %v393_v12 }
  0x29   :  { %292 = vmatpush.bf16.msrb.mxu0 %v392_v13 }
  0xa0   :  { %v153_v14 = vpop.f32.mrf.mxu0  ;;  %v181_v15 = vpop.f32.mrf.mxu1 }
  0xa1   :  { %v182_v16 = vadd.f32 %v181_v15, %v153_v14 }
  0xa7   :  { %v215_v17 = vpop.f32.mrf.mxu2  ;;  %v250_v18 = vpop.f32.mrf.mxu3 }
  0xa8   :  { %v219_v19 = vadd.f32 %v215_v17, %v182_v16  ;;  %v155_v21 = vpop.f32.mrf.mxu0  ;;  %v183_v22 = vpop.f32.mrf.mxu1 }
  0xaa   :  { %v254_v23 = vadd.f32 %v250_v18, %v219_v19 }
  0xac   :  { %v259_v24 = vadd.f32 %v403_v20, %v254_v23 }
  0xae   :  { %405 = vtanh.f32 %v259_v24 }
  0xaf   :  { %v217_v25 = vpop.f32.mrf.mxu2  ;;  %v252_v26 = vpop.f32.mrf.mxu3 }
  0xb4   :  { %v406_v27 = vpop.eup %405 }
  0xb5   :  { %v261_v28 = vpack.c.bf16 %v406_v27, %v406_v27 }
  0xb7   :  { %382 = vmatmul.msk.bf16.vlgmr.msrb.gmra.mxu0 %vm140_vm0, %v261_v28 }
 0x134   :  { %v294_v30 = vpop.f32.mrf.mxu0 }
 0x135   :  { %v295_v31 = vadd.f32 %v404_v29, %v294_v30 }
 0x137   :  { %v383_v32 = vmul.f32 -1.442695, %v295_v31 }
 0x139   :  { %407 = vpow2.f32 %v383_v32 }
 0x13c   :  { %v296_v33 = vpop.f32.mrf.mxu0 }
 0x13f   :  { %v408_v34 = vpop.eup %407 }
 0x140   :  { %v301_v35 = vadd.f32 1.0, %v408_v34 }
 0x142   :  { %409 = vrcp.f32 %v301_v35  ;;  %v313_v39 = vand.u32 2147483648, %v301_v35  ;;  %v311_v41 = vand.u32 2147483647, %v301_v35  ;;  %vm307_vm2 = vweird.f32 %v301_v35 }
 0x144   :  { %v314_v43 = vor.u32 1.1754944e-38, %v313_v39  ;;  %vm312_vm4 = vcmp.eq.f32.partialorder %v311_v41, 8.507059e+37 }
 0x148   :  { %v410_v36 = vpop.eup %409 }
 0x149   :  { %v303_v37 = vmul.f32 %v410_v36, %v301_v35  ;;  %vm308_vm1 = vweird.f32 %v410_v36 }
 0x14a   :  { %vm309_vm3 = vmor %vm307_vm2, %vm308_vm1 }
 0x14b   :  { %v304_v38 = vsub.f32 1.0, %v303_v37 }
 0x14d   :  { %v305_v40 = vmul.f32 %v410_v36, %v304_v38 }
 0x14f   :  { %v306_v42 = vadd.f32 %v410_v36, %v305_v40 }
 0x151   :  { %v310_v44 = vsel %vm309_vm3, %v410_v36, %v306_v42 }
 0x152   :  { %v315_v45 = vsel %vm312_vm4, %v314_v43, %v310_v44 }
 0x153   :  { %317 = vst [vmem:[#allocation13] sm:$0xff] %v315_v45 }
 0x154   :  { %328 = dma.vmem_to_hbm [thread:$0]  %s324_s13, 128, %s326_s7, [#allocation4]  }
 0x155   :  { %587 = dma.done.wait [#allocation4], 128  }
 0x156   :  { %588 = vsyncadd [#allocation4], 4294967168 }
 0x157   :  { %333 = vsyncpa [#allocation3], 1 }
 0x158   :  { %334 = vsyncpa [#allocation6], 1 }
 0x159   :  { %335 = vsyncpa [#allocation9], 1 }
 0x15a   :  { %336 = vsyncpa [#allocation12], 1 }
 0x15b   :  { %337 = vsyncpa [#allocation4], 1 }

</bundles_post_ra>
